<compile_context>
chip_gen: v5e
topology: v5e:2x2
jax: 0.10.0
libtpu: 0.0.40
codegen_flags: <defaults>
</compile_context>

<pallas_src>
import jax
import jax.numpy as jnp
import numpy as np
from jax.experimental import pallas as pl
from jax.experimental.pallas import tpu as pltpu


# ----------------------------------------------------------------------------
# Primary path: zero-traffic aliased no-op (input stays in HBM, output aliases
# it, nothing is DMA'd).
# ----------------------------------------------------------------------------
def _noop_kernel(x_ref, o_ref):
    del x_ref  # bytes are already in place: o_ref aliases the input buffer
    pltpu.touch(o_ref)  # fake write dep so the aliased output materializes


def _identity_noop(x):
    return pl.pallas_call(
        _noop_kernel,
        out_shape=jax.ShapeDtypeStruct(x.shape, x.dtype),
        in_specs=[pl.BlockSpec(memory_space=pl.ANY)],
        out_specs=pl.BlockSpec(memory_space=pl.ANY),
        input_output_aliases={0: 0},
        cost_estimate=pl.CostEstimate(
            flops=0, transcendentals=0, bytes_accessed=0),
    )(x)


# ----------------------------------------------------------------------------
# Fallback path: lane-dense tiled copy (only used if the no-op variant cannot
# be lowered).  Incorporates the review's tiling feedback.
# ----------------------------------------------------------------------------
def _copy_kernel(x_ref, o_ref):
    o_ref[...] = x_ref[...]


# Large multiples of 128 first -> unmasked full-width vector stores.
_LANE_CANDIDATES = (8192, 4096, 2048, 1024, 512, 256, 128)


def _identity_copy(x):
    n = int(x.size)
    itemsize = int(jnp.dtype(x.dtype).itemsize)

    cols = None
    for cand in _LANE_CANDIDATES:
        if n % cand == 0:
            cols = cand
            break
    if cols is None:
        # Awkward element count (not a multiple of 128): keep the identity at
        # the JAX level instead of emitting masked sub-128-lane stores.
        return x

    rows = n // cols
    x2d = x.reshape(rows, cols)
    row_bytes = cols * itemsize

    if rows * row_bytes <= (8 << 20):
        # Small input: single full-extent block (satisfies tiling rule).
        block_rows = rows
    else:
        # ~4 MiB per block buffer; in+out double-buffered stays <= 16 MiB,
        # safe under the scoped-VMEM limits of v5e/v6e/v7x.
        sublane = {4: 8, 2: 16, 1: 32}.get(itemsize, 8)
        block_rows = max(sublane, min(1024, (4 << 20) // row_bytes))
        block_rows = max(sublane, (block_rows // sublane) * sublane)

    grid = (pl.cdiv(rows, block_rows),)

    out = pl.pallas_call(
        _copy_kernel,
        out_shape=jax.ShapeDtypeStruct((rows, cols), x.dtype),
        grid=grid,
        in_specs=[pl.BlockSpec((block_rows, cols), lambda i: (i, 0))],
        out_specs=pl.BlockSpec((block_rows, cols), lambda i: (i, 0)),
        input_output_aliases={0: 0},
        compiler_params=pltpu.CompilerParams(
            dimension_semantics=("parallel",),
            vmem_limit_bytes=32 << 20,
        ),
        cost_estimate=pl.CostEstimate(
            flops=0, transcendentals=0, bytes_accessed=2 * n * itemsize),
    )(x2d)
    return out.reshape(x.shape)


# ----------------------------------------------------------------------------
# Public wrapper.
# ----------------------------------------------------------------------------
def naturalspeech_forward(x):
    """Pallas implementation of NaturalSpeech.forward (identity)."""
    if x.ndim == 0 or x.size == 0:
        # Nothing worth routing through a TPU kernel.
        return x
    try:
        return _identity_noop(x)
    except Exception:
        # Defensive fallback if the ANY-space no-op variant fails to lower.
        return _identity_copy(x)


if __name__ == "__main__":
    key = jax.random.PRNGKey(0)
    # NCHW-style input consistent with a conv-style speech model input.
    x = jax.random.normal(key, (2, 4, 16, 16), dtype=jnp.float32)

    # Snapshot to host before the call: the output may alias/donate x's buffer.
    x_host = np.asarray(jax.device_get(x))

    y = naturalspeech_forward(x)
    y = jax.block_until_ready(y)

    assert y.shape == x_host.shape
    assert y.dtype == x_host.dtype
    assert np.array_equal(np.asarray(jax.device_get(y)), x_host)

    print("KERNEL_OK")
</pallas_src>

<mosaic_0001>
module attributes {stable_mosaic.version = 11 : i64} {
  func.func @_noop_kernel(%arg0: memref<2x4x16x16xf32, #tpu.memory_space<any>>, %arg1: memref<2x4x16x16xf32, #tpu.memory_space<any>>) attributes {dimension_semantics = [], scalar_prefetch = 0 : i64, scratch_operands = 0 : i64, tpu.core_type = #tpu.core_type<tc>} {
    return
  }
}

module attributes {stable_mosaic.version = 11 : i64} {
  func.func @_copy_kernel(%arg0: i32, %arg1: memref<1x2048xf32, #tpu.memory_space<vmem>>, %arg2: memref<1x2048xf32, #tpu.memory_space<vmem>>) attributes {dimension_semantics = [#tpu.dimension_semantics<parallel>], iteration_bounds = array<i64: 1>, scalar_prefetch = 0 : i64, scratch_operands = 0 : i64, tpu.core_type = #tpu.core_type<tc>, window_params = [{transform_indices = @transform_0, window_bounds = array<i64: 1, 2048>}, {transform_indices = @transform_1, window_bounds = array<i64: 1, 2048>}]} {
    %c0 = arith.constant 0 : index
    %c0_0 = arith.constant 0 : index
    %0 = vector.load %arg1[%c0, %c0_0] : memref<1x2048xf32, #tpu.memory_space<vmem>>, vector<1x2048xf32>
    %c0_1 = arith.constant 0 : index
    %c0_2 = arith.constant 0 : index
    %1 = vector.load %arg2[%c0_1, %c0_2] : memref<1x2048xf32, #tpu.memory_space<vmem>>, vector<1x2048xf32>
    tpu.vector_store %arg2[%c0_1, %c0_2], %0 {strides = array<i32>} : memref<1x2048xf32, #tpu.memory_space<vmem>>, vector<1x2048xf32>,
    return
  }
  func.func @transform_0(%arg0: i32) -> (i32, i32) {
    %c0_i32 = arith.constant 0 : i32
    %c0_i32_0 = arith.constant 0 : i32
    return %arg0, %c0_i32 : i32, i32
  }
  func.func @transform_1(%arg0: i32) -> (i32, i32) {
    %c0_i32 = arith.constant 0 : i32
    %c0_i32_0 = arith.constant 0 : i32
    return %arg0, %c0_i32 : i32, i32
  }
}

</mosaic_0001>

<bundles_post_ra>
// kernel: tpu_custom_call.1
= control target key start
LH: loop header
LB: loop body
LE: loop exit
PB: predicated region body
PF: predicated region fallthrough
CT: control target
= control target key end

     0   :  { %s16_s0 = inlined_call_operand.hbm [shape: f32[2,4,16,16], index: 0, kind: input, shape index: {}, may-alias: {0,1}]   ;;  %s17_s1 = inlined_call_operand.hbm [shape: f32[2,4,16,16], index: 1, kind: output, shape index: {}, may-alias: {0,1}]  }

// kernel: tpu_custom_call.1
= control target key start
LH: loop header
LB: loop body
LE: loop exit
PB: predicated region body
PF: predicated region fallthrough
CT: control target
= control target key end

     0   :  { %6 = vsyncpa [#allocation3], 0  ;;  %s116_s0 = inlined_call_operand.hbm [shape: f32[1,2048], index: 0, kind: input, shape index: {}, may-alias: {0,1}]   ;;  %s117_s1 = inlined_call_operand.hbm [shape: f32[1,2048], index: 1, kind: output, shape index: {}, may-alias: {0,1}]  }
   0x1   :  { %7 = vsyncpa [#allocation4], 0  ;;  %s13_s8 = sshll.u32 %s116_s0, 4  ;;  %s98_s9 = smov [#allocation2]   ;;  %s14_s8 = int_to_ptr.hbm [resolvable:$true] %s13_s8 }
   0x2   :  { %s15_s10 = sshll.u32 %s98_s9, 4  ;;  %s16_s10 = int_to_ptr.vmem [resolvable:$true] %s15_s10 }
   0x3   :  { %18 = dma.hbm_to_vmem [thread:$0]  %s14_s8, 256, %s16_s10, [#allocation3]  }
   0x4   :  { %94 = dma.done.wait [#allocation3], 256  }
   0x5   :  { %95 = vsyncadd [#allocation3], 4294967040  ;;  %s99_s11 = smov [#allocation5]   ;;  %s34_s15 = sshll.u32 %s117_s1, 4  ;;  %v23_v0 = vld [vmem:[#allocation2] sm:$0xff]  ;;  %v24_v1 = vld [vmem:[#allocation2 + $0x8] sm:$0xff]  ;;  %s35_s15 = int_to_ptr.hbm [resolvable:$true] %s34_s15 }
   0x6   :  { %s32_s12 = sshll.u32 %s99_s11, 4  ;;  %25 = vst [vmem:[#allocation5] sm:$0xff] %v23_v0  ;;  %s33_s12 = int_to_ptr.vmem [resolvable:$true] %s32_s12 }
   0x7   :  { %26 = vst [vmem:[#allocation5 + $0x8] sm:$0xff] %v24_v1 }
   0x8   :  { %37 = dma.vmem_to_hbm [thread:$0]  %s33_s12, 256, %s35_s15, [#allocation4]  }
   0x9   :  { %96 = dma.done.wait [#allocation4], 256  }
   0xa   :  { %97 = vsyncadd [#allocation4], 4294967040 }
   0xb   :  { %42 = vsyncpa [#allocation3], 1 }
   0xc   :  { %43 = vsyncpa [#allocation4], 1 }

</bundles_post_ra>
